<compile_context>
chip_gen: v7x
topology: tpu7x:2x2x1
jax: 0.10.0
libtpu: 0.0.40
codegen_flags: <defaults>
</compile_context>

<pallas_src>
import functools
import math

import jax
import jax.numpy as jnp
from jax.experimental import pallas as pl
from jax.experimental.pallas import tpu as pltpu

LRELU_SLOPE = 0.1

# ----------------------------- static configs ------------------------------
P_PERIODS = [2, 3, 5, 7, 11]

# DiscriminatorS convs: (cin, cout, kernel, stride, groups, padding)
S_CONVS = [
    (1, 16, 15, 1, 1, 7),
    (16, 64, 41, 4, 4, 20),
    (64, 256, 41, 4, 16, 20),
    (256, 1024, 41, 4, 64, 20),
    (1024, 1024, 41, 4, 256, 20),
    (1024, 1024, 5, 1, 1, 2),
]
S_POST = (1024, 1, 3, 1, 1, 1)

# DiscriminatorP convs (Conv2d with kernel (k,1)): (cin, cout, kernel, stride)
P_CONVS = [
    (1, 32, 5, 3),
    (32, 128, 5, 3),
    (128, 512, 5, 3),
    (512, 1024, 5, 3),
    (1024, 1024, 5, 1),
]
P_POST = (1024, 1, 3, 1)

COMPUTE_DTYPE = jnp.bfloat16       # wire dtype; MXU accumulation is f32.

_TN_CAP = 4096                     # max lane tile on the T_out axis
_VMEM_BUDGET = 20 * 1024 * 1024    # target for double-buffered blocks
_VMEM_LIMIT = 32 * 1024 * 1024     # explicit scoped-VMEM limit (v5e/v6e/v7x safe)
_MAX_GB = 32                       # max groups folded into one grid step


# ------------------------------ Pallas kernel -------------------------------
def _conv_mm_kernel(w_ref, x_ref, b_ref, o_ref, *, gb, slope):
    """Per grid step: for each of `gb` groups, (Cout_g, K) @ (K, tn) + bias,
    optional leaky-relu, bf16 store.  Full-K single dot => no accumulator."""
    for g in range(gb):
        acc = jnp.dot(w_ref[g], x_ref[0, g],
                      preferred_element_type=jnp.float32)
        acc = acc + b_ref[g]
        if slope is not None:
            acc = jnp.where(acc >= 0, acc, slope * acc)
        o_ref[0, g] = acc.astype(o_ref.dtype)


def _pick_tiles(G, Mw, K, N):
    """Choose (group-block, M-tile, lane-tile) under a VMEM budget."""
    tm = Mw if Mw <= 512 else 512

    def fits(gb, tn):
        # lhs + rhs + out blocks, bf16, double-buffered.
        return 4 * gb * (tm * K + K * tn + tm * tn) <= _VMEM_BUDGET

    if N <= _TN_CAP and fits(1, N):
        tn = N                                   # full-extent lane block
    else:
        tn = min(_TN_CAP, max(128, (N // 128) * 128))
        while tn > 128 and not fits(1, tn):
            tn -= 128

    gb = 1
    while gb < min(G, _MAX_GB) and G % (gb * 2) == 0 and fits(gb * 2, tn):
        gb *= 2
    return gb, tm, tn


def grouped_conv_matmul(w, x, bias, slope):
    """w: (G, Cout_g, K) bf16, x: (B, G, K, N) bf16, bias: (G, Cout_g, 1) f32
    -> (B, G, Cout_g, N) bf16 with out[b, g] = act(w[g] @ x[b, g] + bias[g])."""
    G, Mw, K = w.shape
    B, _, _, N = x.shape
    gb, tm, tn = _pick_tiles(G, Mw, K, N)
    grid = (G // gb, pl.cdiv(Mw, tm), B, pl.cdiv(N, tn))
    mt = grid[1]

    cost = pl.CostEstimate(
        flops=2 * B * G * Mw * K * N,
        transcendentals=0,
        # Weight blocks stay VMEM-resident across the (B, N) sweep -> read
        # roughly once; patches are re-read once per M-tile.
        bytes_accessed=int(w.size * 2 + x.size * 2 * mt + bias.size * 4
                           + B * G * Mw * N * 2),
    )

    return pl.pallas_call(
        functools.partial(_conv_mm_kernel, gb=gb, slope=slope),
        out_shape=jax.ShapeDtypeStruct((B, G, Mw, N), COMPUTE_DTYPE),
        grid_spec=pltpu.PrefetchScalarGridSpec(
            num_scalar_prefetch=0,
            grid=grid,
            in_specs=[
                pl.BlockSpec((gb, tm, K), lambda g, m, b, n: (g, m, 0)),
                pl.BlockSpec((1, gb, K, tn), lambda g, m, b, n: (b, g, 0, n)),
                pl.BlockSpec((gb, tm, 1), lambda g, m, b, n: (g, m, 0)),
            ],
            out_specs=pl.BlockSpec((1, gb, tm, tn),
                                   lambda g, m, b, n: (b, g, m, n)),
        ),
        compiler_params=pltpu.CompilerParams(
            dimension_semantics=("parallel", "parallel", "parallel", "parallel"),
            vmem_limit_bytes=_VMEM_LIMIT,
        ),
        cost_estimate=cost,
    )(w, x, bias)


# ---------------------------- conv wrapper (glue) ---------------------------
def conv1d(x, w, b, stride, padding, groups=1, slope=None):
    """x: (B, Cin, T), w: (Cout, Cin//groups, k), b: (Cout,) -> (B, Cout, T_out)
    in bf16.  Channels-first in and out; im2col is k static strided slices
    stacked on a tap axis (no gather, no patch-sized transposes)."""
    B, Cin, T = x.shape
    Cout, Cin_g, k = w.shape
    G = groups
    Mw = Cout // G

    xp = jnp.pad(x.astype(COMPUTE_DTYPE), ((0, 0), (0, 0), (padding, padding)))
    Tp = T + 2 * padding
    N = (Tp - k) // stride + 1
    xr = xp.reshape(B, G, Cin_g, Tp)

    # k static strided slices -> (B, G, Cin_g, k, N) -> (B, G, K, N)
    taps = [xr[..., t:t + stride * (N - 1) + 1:stride] for t in range(k)]
    patches = jnp.stack(taps, axis=3).reshape(B, G, Cin_g * k, N)

    wg = w.astype(COMPUTE_DTYPE).reshape(G, Mw, Cin_g * k)
    bg = b.astype(jnp.float32).reshape(G, Mw, 1)

    y = grouped_conv_matmul(wg, patches, bg, slope)      # (B, G, Mw, N)
    return y.reshape(B, Cout, N)


# ----------------------------- discriminators ------------------------------
def disc_s_forward(ps, x):
    fmap = []
    for (w, b), (_, _, _, stride, groups, pad) in zip(ps[:-1], S_CONVS):
        x = conv1d(x, w, b, stride, pad, groups, slope=LRELU_SLOPE)
        fmap.append(x)
    w, b = ps[-1]
    x = conv1d(x, w, b, S_POST[3], S_POST[5], S_POST[4], slope=None)
    fmap.append(x)
    return x.reshape(x.shape[0], -1), fmap


def _to_nchw(xs, b, period):
    """(B*P, C, H) column-sequence layout -> PyTorch Conv2d (B, C, H, P)."""
    _, c, h = xs.shape
    return jnp.transpose(xs.reshape(b, period, c, h), (0, 2, 3, 1))


def disc_p_forward(ps, x, period):
    b_, c, t = x.shape
    if t % period != 0:
        n_pad = period - t % period
        assert n_pad <= t - 1, "input too short for reflect padding"
        x = jnp.pad(x, ((0, 0), (0, 0), (0, n_pad)), mode="reflect")
        t = t + n_pad
    h = t // period
    # Only the raw (C == 1) waveform is transposed; every conv then runs in
    # the (B*P, C, H) column-sequence layout with no further layout changes.
    xs = jnp.transpose(x.reshape(b_, c, h, period), (0, 3, 1, 2))
    xs = xs.reshape(b_ * period, c, h)

    fmap = []
    for (w, bias), (_, _, k, stride) in zip(ps[:-1], P_CONVS):
        xs = conv1d(xs, w[..., 0], bias, stride, (k - 1) // 2,
                    groups=1, slope=LRELU_SLOPE)
        fmap.append(_to_nchw(xs, b_, period))
    w, bias = ps[-1]
    xs = conv1d(xs, w[..., 0], bias, P_POST[3], (P_POST[2] - 1) // 2,
                groups=1, slope=None)
    fmap.append(_to_nchw(xs, b_, period))
    out = fmap[-1].reshape(b_, -1)
    return out, fmap


def mpd_forward(params, y, y_hat):
    """y and y_hat are run through each discriminator in ONE concatenated call
    so weight panels stream from HBM once per layer.  Feature maps stay bf16
    (next layer re-casts anyway); final scores are f32."""
    B = y.shape[0]
    x = jnp.concatenate([y, y_hat], axis=0).astype(COMPUTE_DTYPE)

    y_d_rs, y_d_gs, fmap_rs, fmap_gs = [], [], [], []

    out, fmaps = disc_s_forward(params["s"], x)
    y_d_rs.append(out[:B].astype(jnp.float32))
    y_d_gs.append(out[B:].astype(jnp.float32))
    fmap_rs.append([f[:B] for f in fmaps])
    fmap_gs.append([f[B:] for f in fmaps])

    for period, ps in zip(P_PERIODS, params["p"]):
        out, fmaps = disc_p_forward(ps, x, period)
        y_d_rs.append(out[:B].astype(jnp.float32))
        y_d_gs.append(out[B:].astype(jnp.float32))
        fmap_rs.append([f[:B] for f in fmaps])
        fmap_gs.append([f[B:] for f in fmaps])

    return y_d_rs, y_d_gs, fmap_rs, fmap_gs


# ----------------------------- parameter init ------------------------------
# NOTE: weight_norm / spectral_norm are reparameterizations only; the forward
# pass just sees an effective weight, initialized directly here.
def _init_conv(key, cout, cin_g, *ks):
    fan_in = cin_g * math.prod(ks)
    kw, kb = jax.random.split(key)
    w = jax.random.normal(kw, (cout, cin_g) + tuple(ks), jnp.float32) / math.sqrt(fan_in)
    b = jax.random.normal(kb, (cout,), jnp.float32) * 0.01
    return w, b


def init_params(key):
    ks, kp = jax.random.split(key)

    s_keys = jax.random.split(ks, len(S_CONVS) + 1)
    s_params = []
    for k_i, (cin, cout, k, _, groups, _) in zip(s_keys[:-1], S_CONVS):
        s_params.append(_init_conv(k_i, cout, cin // groups, k))
    s_params.append(_init_conv(s_keys[-1], S_POST[1], S_POST[0], S_POST[2]))

    p_params = []
    p_keys = jax.random.split(kp, len(P_PERIODS))
    for kper in p_keys:
        layer_keys = jax.random.split(kper, len(P_CONVS) + 1)
        layers = []
        for k_i, (cin, cout, k, _) in zip(layer_keys[:-1], P_CONVS):
            layers.append(_init_conv(k_i, cout, cin, k, 1))
        layers.append(_init_conv(layer_keys[-1], P_POST[1], P_POST[0], P_POST[2], 1))
        p_params.append(layers)

    return {"s": s_params, "p": p_params}


# ---------------------------------- main ------------------------------------
if __name__ == "__main__":
    key = jax.random.PRNGKey(0)
    k_y, k_yh, k_params, k_chk = jax.random.split(key, 4)

    B, C, T = 2, 1, 1024                      # small waveform batch (NCT)
    y = jax.random.normal(k_y, (B, C, T), jnp.float32)
    y_hat = jax.random.normal(k_yh, (B, C, T), jnp.float32)
    params = init_params(k_params)

    # --- correctness spot-check of the Pallas grouped conv vs XLA's conv ----
    kx, kw, kb = jax.random.split(k_chk, 3)
    cx = jax.random.normal(kx, (2, 16, 256), jnp.float32).astype(COMPUTE_DTYPE)
    cw = jax.random.normal(kw, (64, 4, 41), jnp.float32) / math.sqrt(4 * 41)
    cb = jax.random.normal(kb, (64,), jnp.float32) * 0.01
    ours = conv1d(cx, cw, cb, stride=4, padding=20, groups=4,
                  slope=LRELU_SLOPE).astype(jnp.float32)
    ref = jax.lax.conv_general_dilated(
        cx.astype(jnp.float32), cw, window_strides=(4,), padding=[(20, 20)],
        dimension_numbers=("NCH", "OIH", "NCH"), feature_group_count=4)
    ref = ref + cb[None, :, None]
    ref = jnp.where(ref >= 0, ref, LRELU_SLOPE * ref)
    ref = ref.astype(COMPUTE_DTYPE).astype(jnp.float32)
    err = float(jnp.max(jnp.abs(ours - ref)))
    assert err < 3e-2, f"conv mismatch vs lax reference: {err}"

    fwd = jax.jit(mpd_forward)
    out = fwd(params, y, y_hat)
    out = jax.tree_util.tree_map(jax.block_until_ready, out)

    # structural sanity checks: 6 discriminators (1 S + 5 P); S has 7 fmaps,
    # each P has 6 fmaps; P fmaps are NCHW (B, C, H, period).
    y_d_rs, y_d_gs, fmap_rs, fmap_gs = out
    assert len(y_d_rs) == 6 and len(y_d_gs) == 6
    assert len(fmap_rs) == 6 and len(fmap_gs) == 6
    assert len(fmap_rs[0]) == 7 and len(fmap_gs[0]) == 7
    assert all(len(f) == 6 for f in fmap_rs[1:])
    assert all(len(f) == 6 for f in fmap_gs[1:])
    assert all(a.shape[0] == B for a in y_d_rs)
    assert fmap_rs[1][0].ndim == 4 and fmap_rs[1][0].shape[-1] == P_PERIODS[0]
    assert all(bool(jnp.all(jnp.isfinite(a))) for a in y_d_rs)
    assert all(bool(jnp.all(jnp.isfinite(a))) for a in y_d_gs)

    print("KERNEL_OK")
</pallas_src>

<mosaic_0001>
module attributes {stable_mosaic.version = 11 : i64} {
  func.func @_conv_mm_kernel(%arg0: i32, %arg1: i32, %arg2: i32, %arg3: i32, %arg4: memref<4x16x164xbf16, #tpu.memory_space<vmem>>, %arg5: memref<1x4x164x64xbf16, #tpu.memory_space<vmem>>, %arg6: memref<4x16x1xf32, #tpu.memory_space<vmem>>, %arg7: memref<1x4x16x64xbf16, #tpu.memory_space<vmem>>) attributes {dimension_semantics = [#tpu.dimension_semantics<parallel>, #tpu.dimension_semantics<parallel>, #tpu.dimension_semantics<parallel>, #tpu.dimension_semantics<parallel>], iteration_bounds = array<i64: 1, 1, 2, 1>, scalar_prefetch = 0 : i64, scratch_operands = 0 : i64, tpu.core_type = #tpu.core_type<tc>, window_params = [{transform_indices = @transform_0, window_bounds = array<i64: 4, 16, 164>}, {transform_indices = @transform_1, window_bounds = array<i64: 1, 4, 164, 64>}, {transform_indices = @transform_2, window_bounds = array<i64: 4, 16, 1>}, {transform_indices = @transform_3, window_bounds = array<i64: 1, 4, 16, 64>}]} {
    %c0 = arith.constant 0 : index
    %c0_0 = arith.constant 0 : index
    %c0_1 = arith.constant 0 : index
    %0 = vector.load %arg4[%c0, %c0_0, %c0_1] : memref<4x16x164xbf16, #tpu.memory_space<vmem>>, vector<1x16x164xbf16>
    %1 = vector.shape_cast %0 : vector<1x16x164xbf16> to vector<16x164xbf16>
    %c0_2 = arith.constant 0 : index
    %c0_3 = arith.constant 0 : index
    %c0_4 = arith.constant 0 : index
    %c0_5 = arith.constant 0 : index
    %2 = vector.load %arg5[%c0_2, %c0_3, %c0_4, %c0_5] : memref<1x4x164x64xbf16, #tpu.memory_space<vmem>>, vector<1x1x164x64xbf16>
    %3 = vector.shape_cast %2 : vector<1x1x164x64xbf16> to vector<164x64xbf16>
    %cst = arith.constant dense<0.000000e+00> : vector<16x64xf32>
    %4 = tpu.matmul %1, %3, %cst {dimension_numbers = #tpu.dot_dimension_numbers<[1], [0], [0], [1], [0, 0, 1, 1], [], []>} : vector<16x164xbf16>, vector<164x64xbf16>, vector<16x64xf32> -> vector<16x64xf32>
    %c0_6 = arith.constant 0 : index
    %c0_7 = arith.constant 0 : index
    %c0_8 = arith.constant 0 : index
    %5 = vector.load %arg6[%c0_6, %c0_7, %c0_8] : memref<4x16x1xf32, #tpu.memory_space<vmem>>, vector<1x16x1xf32>
    %6 = vector.shape_cast %5 : vector<1x16x1xf32> to vector<16x1xf32>
    %7 = vector.broadcast %6 : vector<16x1xf32> to vector<16x64xf32>
    %8 = arith.addf %4, %7 : vector<16x64xf32>
    %cst_9 = arith.constant 0.000000e+00 : f32
    %9 = vector.broadcast %cst_9 : f32 to vector<16x64xf32>
    %10 = arith.cmpf oge, %8, %9 : vector<16x64xf32>
    %cst_10 = arith.constant 1.000000e-01 : f32
    %11 = vector.broadcast %cst_10 : f32 to vector<16x64xf32>
    %12 = arith.mulf %11, %8 : vector<16x64xf32>
    %13 = arith.select %10, %8, %12 : vector<16x64xi1>, vector<16x64xf32>
    %14 = arith.truncf %13 : vector<16x64xf32> to vector<16x64xbf16>
    %c0_11 = arith.constant 0 : index
    %c0_12 = arith.constant 0 : index
    %c0_13 = arith.constant 0 : index
    %c0_14 = arith.constant 0 : index
    %15 = vector.load %arg7[%c0_11, %c0_12, %c0_13, %c0_14] : memref<1x4x16x64xbf16, #tpu.memory_space<vmem>>, vector<1x1x16x64xbf16>
    %16 = vector.shape_cast %15 : vector<1x1x16x64xbf16> to vector<16x64xbf16>
    %17 = vector.shape_cast %14 : vector<16x64xbf16> to vector<1x1x16x64xbf16>
    tpu.vector_store %arg7[%c0_11, %c0_12, %c0_13, %c0_14], %17 {strides = array<i32>} : memref<1x4x16x64xbf16, #tpu.memory_space<vmem>>, vector<1x1x16x64xbf16>,
    %c1 = arith.constant 1 : index
    %c0_15 = arith.constant 0 : index
    %c0_16 = arith.constant 0 : index
    %18 = vector.load %arg4[%c1, %c0_15, %c0_16] : memref<4x16x164xbf16, #tpu.memory_space<vmem>>, vector<1x16x164xbf16>
    %19 = vector.shape_cast %18 : vector<1x16x164xbf16> to vector<16x164xbf16>
    %c0_17 = arith.constant 0 : index
    %c1_18 = arith.constant 1 : index
    %c0_19 = arith.constant 0 : index
    %c0_20 = arith.constant 0 : index
    %20 = vector.load %arg5[%c0_17, %c1_18, %c0_19, %c0_20] : memref<1x4x164x64xbf16, #tpu.memory_space<vmem>>, vector<1x1x164x64xbf16>
    %21 = vector.shape_cast %20 : vector<1x1x164x64xbf16> to vector<164x64xbf16>
    %cst_21 = arith.constant dense<0.000000e+00> : vector<16x64xf32>
    %22 = tpu.matmul %19, %21, %cst_21 {dimension_numbers = #tpu.dot_dimension_numbers<[1], [0], [0], [1], [0, 0, 1, 1], [], []>} : vector<16x164xbf16>, vector<164x64xbf16>, vector<16x64xf32> -> vector<16x64xf32>
    %c1_22 = arith.constant 1 : index
    %c0_23 = arith.constant 0 : index
    %c0_24 = arith.constant 0 : index
    %23 = vector.load %arg6[%c1_22, %c0_23, %c0_24] : memref<4x16x1xf32, #tpu.memory_space<vmem>>, vector<1x16x1xf32>
    %24 = vector.shape_cast %23 : vector<1x16x1xf32> to vector<16x1xf32>
    %25 = vector.broadcast %24 : vector<16x1xf32> to vector<16x64xf32>
    %26 = arith.addf %22, %25 : vector<16x64xf32>
    %cst_25 = arith.constant 0.000000e+00 : f32
    %27 = vector.broadcast %cst_25 : f32 to vector<16x64xf32>
    %28 = arith.cmpf oge, %26, %27 : vector<16x64xf32>
    %cst_26 = arith.constant 1.000000e-01 : f32
    %29 = vector.broadcast %cst_26 : f32 to vector<16x64xf32>
    %30 = arith.mulf %29, %26 : vector<16x64xf32>
    %31 = arith.select %28, %26, %30 : vector<16x64xi1>, vector<16x64xf32>
    %32 = arith.truncf %31 : vector<16x64xf32> to vector<16x64xbf16>
    %c0_27 = arith.constant 0 : index
    %c1_28 = arith.constant 1 : index
    %c0_29 = arith.constant 0 : index
    %c0_30 = arith.constant 0 : index
    %33 = vector.load %arg7[%c0_27, %c1_28, %c0_29, %c0_30] : memref<1x4x16x64xbf16, #tpu.memory_space<vmem>>, vector<1x1x16x64xbf16>
    %34 = vector.shape_cast %33 : vector<1x1x16x64xbf16> to vector<16x64xbf16>
    %35 = vector.shape_cast %32 : vector<16x64xbf16> to vector<1x1x16x64xbf16>
    tpu.vector_store %arg7[%c0_27, %c1_28, %c0_29, %c0_30], %35 {strides = array<i32>} : memref<1x4x16x64xbf16, #tpu.memory_space<vmem>>, vector<1x1x16x64xbf16>,
    %c2 = arith.constant 2 : index
    %c0_31 = arith.constant 0 : index
    %c0_32 = arith.constant 0 : index
    %36 = vector.load %arg4[%c2, %c0_31, %c0_32] : memref<4x16x164xbf16, #tpu.memory_space<vmem>>, vector<1x16x164xbf16>
    %37 = vector.shape_cast %36 : vector<1x16x164xbf16> to vector<16x164xbf16>
    %c0_33 = arith.constant 0 : index
    %c2_34 = arith.constant 2 : index
    %c0_35 = arith.constant 0 : index
    %c0_36 = arith.constant 0 : index
    %38 = vector.load %arg5[%c0_33, %c2_34, %c0_35, %c0_36] : memref<1x4x164x64xbf16, #tpu.memory_space<vmem>>, vector<1x1x164x64xbf16>
    %39 = vector.shape_cast %38 : vector<1x1x164x64xbf16> to vector<164x64xbf16>
    %cst_37 = arith.constant dense<0.000000e+00> : vector<16x64xf32>
    %40 = tpu.matmul %37, %39, %cst_37 {dimension_numbers = #tpu.dot_dimension_numbers<[1], [0], [0], [1], [0, 0, 1, 1], [], []>} : vector<16x164xbf16>, vector<164x64xbf16>, vector<16x64xf32> -> vector<16x64xf32>
    %c2_38 = arith.constant 2 : index
    %c0_39 = arith.constant 0 : index
    %c0_40 = arith.constant 0 : index
    %41 = vector.load %arg6[%c2_38, %c0_39, %c0_40] : memref<4x16x1xf32, #tpu.memory_space<vmem>>, vector<1x16x1xf32>
    %42 = vector.shape_cast %41 : vector<1x16x1xf32> to vector<16x1xf32>
    %43 = vector.broadcast %42 : vector<16x1xf32> to vector<16x64xf32>
    %44 = arith.addf %40, %43 : vector<16x64xf32>
    %cst_41 = arith.constant 0.000000e+00 : f32
    %45 = vector.broadcast %cst_41 : f32 to vector<16x64xf32>
    %46 = arith.cmpf oge, %44, %45 : vector<16x64xf32>
    %cst_42 = arith.constant 1.000000e-01 : f32
    %47 = vector.broadcast %cst_42 : f32 to vector<16x64xf32>
    %48 = arith.mulf %47, %44 : vector<16x64xf32>
    %49 = arith.select %46, %44, %48 : vector<16x64xi1>, vector<16x64xf32>
    %50 = arith.truncf %49 : vector<16x64xf32> to vector<16x64xbf16>
    %c0_43 = arith.constant 0 : index
    %c2_44 = arith.constant 2 : index
    %c0_45 = arith.constant 0 : index
    %c0_46 = arith.constant 0 : index
    %51 = vector.load %arg7[%c0_43, %c2_44, %c0_45, %c0_46] : memref<1x4x16x64xbf16, #tpu.memory_space<vmem>>, vector<1x1x16x64xbf16>
    %52 = vector.shape_cast %51 : vector<1x1x16x64xbf16> to vector<16x64xbf16>
    %53 = vector.shape_cast %50 : vector<16x64xbf16> to vector<1x1x16x64xbf16>
    tpu.vector_store %arg7[%c0_43, %c2_44, %c0_45, %c0_46], %53 {strides = array<i32>} : memref<1x4x16x64xbf16, #tpu.memory_space<vmem>>, vector<1x1x16x64xbf16>,
    %c3 = arith.constant 3 : index
    %c0_47 = arith.constant 0 : index
    %c0_48 = arith.constant 0 : index
    %54 = vector.load %arg4[%c3, %c0_47, %c0_48] : memref<4x16x164xbf16, #tpu.memory_space<vmem>>, vector<1x16x164xbf16>
    %55 = vector.shape_cast %54 : vector<1x16x164xbf16> to vector<16x164xbf16>
    %c0_49 = arith.constant 0 : index
    %c3_50 = arith.constant 3 : index
    %c0_51 = arith.constant 0 : index
    %c0_52 = arith.constant 0 : index
    %56 = vector.load %arg5[%c0_49, %c3_50, %c0_51, %c0_52] : memref<1x4x164x64xbf16, #tpu.memory_space<vmem>>, vector<1x1x164x64xbf16>
    %57 = vector.shape_cast %56 : vector<1x1x164x64xbf16> to vector<164x64xbf16>
    %cst_53 = arith.constant dense<0.000000e+00> : vector<16x64xf32>
    %58 = tpu.matmul %55, %57, %cst_53 {dimension_numbers = #tpu.dot_dimension_numbers<[1], [0], [0], [1], [0, 0, 1, 1], [], []>} : vector<16x164xbf16>, vector<164x64xbf16>, vector<16x64xf32> -> vector<16x64xf32>
    %c3_54 = arith.constant 3 : index
    %c0_55 = arith.constant 0 : index
    %c0_56 = arith.constant 0 : index
    %59 = vector.load %arg6[%c3_54, %c0_55, %c0_56] : memref<4x16x1xf32, #tpu.memory_space<vmem>>, vector<1x16x1xf32>
    %60 = vector.shape_cast %59 : vector<1x16x1xf32> to vector<16x1xf32>
    %61 = vector.broadcast %60 : vector<16x1xf32> to vector<16x64xf32>
    %62 = arith.addf %58, %61 : vector<16x64xf32>
    %cst_57 = arith.constant 0.000000e+00 : f32
    %63 = vector.broadcast %cst_57 : f32 to vector<16x64xf32>
    %64 = arith.cmpf oge, %62, %63 : vector<16x64xf32>
    %cst_58 = arith.constant 1.000000e-01 : f32
    %65 = vector.broadcast %cst_58 : f32 to vector<16x64xf32>
    %66 = arith.mulf %65, %62 : vector<16x64xf32>
    %67 = arith.select %64, %62, %66 : vector<16x64xi1>, vector<16x64xf32>
    %68 = arith.truncf %67 : vector<16x64xf32> to vector<16x64xbf16>
    %c0_59 = arith.constant 0 : index
    %c3_60 = arith.constant 3 : index
    %c0_61 = arith.constant 0 : index
    %c0_62 = arith.constant 0 : index
    %69 = vector.load %arg7[%c0_59, %c3_60, %c0_61, %c0_62] : memref<1x4x16x64xbf16, #tpu.memory_space<vmem>>, vector<1x1x16x64xbf16>
    %70 = vector.shape_cast %69 : vector<1x1x16x64xbf16> to vector<16x64xbf16>
    %71 = vector.shape_cast %68 : vector<16x64xbf16> to vector<1x1x16x64xbf16>
    tpu.vector_store %arg7[%c0_59, %c3_60, %c0_61, %c0_62], %71 {strides = array<i32>} : memref<1x4x16x64xbf16, #tpu.memory_space<vmem>>, vector<1x1x16x64xbf16>,
    return
  }
  func.func @transform_0(%arg0: i32, %arg1: i32, %arg2: i32, %arg3: i32) -> (i32, i32, i32) {
    %c0_i32 = arith.constant 0 : i32
    %c0_i32_0 = arith.constant 0 : i32
    return %arg0, %arg1, %c0_i32 : i32, i32, i32
  }
  func.func @transform_1(%arg0: i32, %arg1: i32, %arg2: i32, %arg3: i32) -> (i32, i32, i32, i32) {
    %c0_i32 = arith.constant 0 : i32
    %c0_i32_0 = arith.constant 0 : i32
    return %arg2, %arg0, %c0_i32, %arg3 : i32, i32, i32, i32
  }
  func.func @transform_2(%arg0: i32, %arg1: i32, %arg2: i32, %arg3: i32) -> (i32, i32, i32) {
    %c0_i32 = arith.constant 0 : i32
    %c0_i32_0 = arith.constant 0 : i32
    return %arg0, %arg1, %c0_i32 : i32, i32, i32
  }
  func.func @transform_3(%arg0: i32, %arg1: i32, %arg2: i32, %arg3: i32) -> (i32, i32, i32, i32) {
    %c0_i32 = arith.constant 0 : i32
    return %arg2, %arg0, %arg1, %arg3 : i32, i32, i32, i32
  }
}

</mosaic_0001>

<bundles_post_ra>
// kernel: tpu_custom_call.1
= control target key start
LH: loop header
LB: loop body
LE: loop exit
PB: predicated region body
PF: predicated region fallthrough
CT: control target
= control target key end

     0   :  { %8 = vsyncpa [#allocation3], 0  ;;  %s1848_s0 = inlined_call_operand.vmem [shape: bf16[4,16,164], index: 0, kind: input, shape index: {}]   ;;  %s1849_s1 = inlined_call_operand.vmem [shape: bf16[2,4,164,64], index: 1, kind: input, shape index: {}]   ;;  %s1850_s2 = inlined_call_operand.vmem [shape: f32[4,16,1], index: 2, kind: input, shape index: {}]   ;;  %s1851_s3 = inlined_call_operand.hbm [shape: bf16[2,4,16,64], index: 3, kind: output, shape index: {}]  }
   0x1   :  { %10 = vsyncpa [#allocation3 + $0x1], 0  ;;  %s1562_s12 = smov 0   ;;  %s1564_s13 = smov 0  }
   0x2   :  { %s1566_s14 = smov 0   ;;  %s1568_s15 = smov 0  }
   0x3   :  { %s1570_s16 = smov 0   ;;  %s1572_s17 = smov 0  }
   0x4 LB: > { %s1173_s18 = sadd.s32 4294967295, %s1536_s17   ;;  %s1174_s19 = sadd.s32 4294967294, %s1536_s17   ;;  %s1536_s17 = sphi %s1572_s17, %s16_s17   ;;  %s1532_s16 = sphi %s1570_s16, %s1858_s16   ;;  %s1528_s15 = sphi %s1568_s15, %s1857_s15   ;;  %s1524_s14 = sphi %s1566_s14, %s1856_s14   ;;  %s1520_s13 = sphi %s1564_s13, %s1855_s13   ;;  %s1516_s12 = sphi %s1562_s12, %s1854_s12  }
   0x5   : > { %s34_s20 = sadd.s32 1, %s1532_s16  ;;  %s141_s21 = sadd.s32 1, %s1524_s14 }
   0x6   : > { %p36_p0 = scmp.ge.s32.totalorder %s34_s20, 2  ;;  %p151_p1 = scmp.ne.s32.totalorder %s1524_s14, %s1520_s13 }
   0x7   : > { %p152_p2 = scmp.eq.s32.totalorder %s1173_s18, 1  ;;  %p157_p3 = scmp.ne.s32.totalorder %s1520_s13, %s1516_s12 }
   0x8   : > { %s1860_s20 = smov (%p36_p0, %s34_s20), 0  ;;  %p158_p5 = scmp.eq.s32.totalorder %s1174_s19, 1 }
   0x9   : > { %p1602_p4 = por %p152_p2, %p151_p1  ;;  %s132_s23 = ssub.s32 %s1532_s16, %s1860_s20 }
   0xa   : > { %p1179_p6 = scmp.ge.s32.totalorder %s1536_s17, 1  ;;  %p139_p7 = scmp.eq.s32.totalorder %s132_s23, 0 }
   0xb   : > { %p1609_p8 = por %p158_p5, %p157_p3  ;;  %p224_p9 = scmp.lt.s32.totalorder %s1536_s17, 3 }
   0xc   : > { %s1615_s25 = scalar_select %p139_p7, %s1524_s14, %s141_s21  }
   0xd   : > { %p225_p10 = pnand %p1179_p6, %p224_p9 }
   0xe   : > { %p291_p11 = scmp.lt.s32.totalorder (!%p225_p10), %s1528_s15, 1  ;;  %vm426_vm0 = vcmask (!%p225_p10), 293888   ;;  %v1538_v0 = vmov (!%p225_p10), 0   ;;  %v1426_v1 = vld [vmem:[%s1848_s0 + $0x4] ss:$8 sps:$4 sm:$0xff] (!%p225_p10)   ;;  %v1221_v3 = vld [vmem:[%s1850_s2 + $0x10] sm:$0xff] (!%p225_p10) }
   0xf   : > { %228 = sbr.rel (%p225_p10) target bundleno = 352 (0x160), region = 32  ;;  %434 = vmatprep.subr.bf16.mxu0 (!%p225_p10), %v1538_v0  ;;  %608 = vmatprep.subr.bf16.mxu1 (!%p225_p10), %v1538_v0  ;;  %v1429_v2 = vld [vmem:[%s1848_s0 + $0x14] ss:$8 sps:$4 sm:$0xff] (!%p225_p10)   ;;  %v342_v4 = vld [vmem:[%s1850_s2] sm:$0xff] (!%p225_p10)  ;;  %v343_v7 = vld [vmem:[%s1850_s2 + $0x8] sm:$0xff] (!%p225_p10)  ;;  %vm430_vm1 = vcmask (!%p225_p10), 1041408  }
  0x10   : > { %1401 = vset.pattern.permute.xlu1 (!%p225_p10), %v1538_v0  ;;  %1400 = vset.pattern.permute.xlu0 (!%p225_p10), %v1538_v0  ;;  %v1222_v5 = vld [vmem:[%s1850_s2 + $0x18] sm:$0xff] (!%p225_p10)  ;;  %v1424_v31 = vld [vmem:[%s1848_s0] ss:$8 sps:$4 sm:$0xff] (!%p225_p10)   ;;  %v1452_v37 = vld [vmem:[%s1848_s0 + $0x24] ss:$8 sps:$4 sm:$0xff] (!%p225_p10)   ;;  %vm489_vm4 = vcmask (!%p225_p10), 519168  }
  0x11   : > { %1195 = vmatprep.mubr.msk.bf16.mxu0 (!%p225_p10), %vm426_vm0, %v1426_v1  ;;  %1236 = vmatprep.mubr.msk.bf16.mxu1 (!%p225_p10), %vm426_vm0, %v1429_v2  ;;  %v1427_v32 = vld [vmem:[%s1848_s0 + $0x10] ss:$8 sps:$4 sm:$0xff] (!%p225_p10)   ;;  %v1265_v34 = vld [vmem:[%s1850_s2 + $0x28] sm:$0xff] (!%p225_p10)  ;;  %v1264_v36 = vld [vmem:[%s1850_s2 + $0x20] sm:$0xff] (!%p225_p10)  ;;  %s1340_s5 = sshll.u32 (!%p225_p10), %s1528_s15, 9  ;;  %s1539_s18 = smov (!%p225_p10), [#allocation2]  }
  0x12   : > { %522 = vperm.xlu1 (!%p225_p10), %1401, %v1221_v3   ;;  %346 = vperm.xlu0 (!%p225_p10), %1400, %v342_v4   ;;  %v1454_v38 = vld [vmem:[%s1848_s0 + $0x34] ss:$8 sps:$4 sm:$0xff] (!%p225_p10)   ;;  %v1456_v63 = vld [vmem:[%s1848_s0 + $0x20] ss:$8 sps:$4 sm:$0xff] (!%p225_p10)   ;;  %v1457_v1 = vld [vmem:[%s1848_s0 + $0x30] ss:$8 sps:$4 sm:$0xff] (!%p225_p10)   ;;  %s1790_s10 = scalar_lea.hbm (!%p225_p10), %s1851_s3, %s1340_s5 }
  0x13   : > { %v1308_v40 = vld [vmem:[%s1850_s2 + $0x38] sm:$0xff] (!%p225_p10)  ;;  %v1307_v42 = vld [vmem:[%s1850_s2 + $0x30] sm:$0xff] (!%p225_p10)  ;;  %s1462_s19 = sshll.u32 (!%p225_p10), %s1539_s18, 4  ;;  %s1463_s19 = int_to_ptr.vmem [resolvable:$false] %s1462_s19 }
  0x14   : > { %s1464_s21 = scalar_lea.vmem (!%p225_p10), %s1463_s19, 1024 }
  0x16   : > { %s292_s28 = scalar_select %p291_p11, %s1528_s15, 1  ;;  %527 = vperm.xlu1 %1401, %v1222_v5   ;;  %351 = vperm.xlu0 %1400, %v343_v7  }
  0x18   : > { %s1341_s4 = smul.u32 336, %s292_s28 }
  0x1a   : > { %s1637_s9 = scalar_lea.vmem %s1849_s1, %s1341_s4  ;;  %701 = vperm.xlu1 %1401, %v1265_v34   ;;  %696 = vperm.xlu0 %1400, %v1264_v36  }
  0x1b   : > { %v1402_v6 = vld [vmem:[%s1637_s9] sm:$0xff]   ;;  %v1403_v8 = vld [vmem:[%s1637_s9 + $0x54] sm:$0xff]   ;;  %v1404_v9 = vld [vmem:[%s1637_s9 + $0x8] sm:$0xff]  }
  0x1c   : > { %435 = vmatpush1.bf16.msra.mxu0 %v1402_v6  ;;  %609 = vmatpush1.bf16.msra.mxu1 %v1403_v8  ;;  %v1405_v10 = vld [vmem:[%s1637_s9 + $0x5c] sm:$0xff]   ;;  %v1406_v11 = vld [vmem:[%s1637_s9 + $0x10] sm:$0xff]   ;;  %v1407_v12 = vld [vmem:[%s1637_s9 + $0x64] sm:$0xff]  }
  0x1d   : > { %436 = vmatprep.subr.bf16.mxu0 %v1538_v0  ;;  %610 = vmatprep.subr.bf16.mxu1 %v1538_v0  ;;  %v1408_v13 = vld [vmem:[%s1637_s9 + $0x18] sm:$0xff]   ;;  %v1409_v14 = vld [vmem:[%s1637_s9 + $0x6c] sm:$0xff]   ;;  %v1410_v15 = vld [vmem:[%s1637_s9 + $0x20] sm:$0xff]  }
  0x1e   : > { %v1411_v16 = vld [vmem:[%s1637_s9 + $0x74] sm:$0xff]   ;;  %v1412_v17 = vld [vmem:[%s1637_s9 + $0x28] sm:$0xff]   ;;  %v1413_v18 = vld [vmem:[%s1637_s9 + $0x7c] sm:$0xff]   ;;  %875 = vperm.xlu1 %1401, %v1308_v40   ;;  %870 = vperm.xlu0 %1400, %v1307_v42  }
  0x1f   : > { %v1414_v19 = vld [vmem:[%s1637_s9 + $0x30] sm:$0xff]   ;;  %v1415_v20 = vld [vmem:[%s1637_s9 + $0x84] sm:$0xff]   ;;  %v1416_v21 = vld [vmem:[%s1637_s9 + $0x38] sm:$0xff]  }
  0x20   : > { %437 = vmatpush1.bf16.msra.mxu0 %v1404_v9  ;;  %611 = vmatpush1.bf16.msra.mxu1 %v1405_v10  ;;  %v1417_v22 = vld [vmem:[%s1637_s9 + $0x8c] sm:$0xff]   ;;  %v1418_v23 = vld [vmem:[%s1637_s9 + $0x40] sm:$0xff]   ;;  %v1419_v24 = vld [vmem:[%s1637_s9 + $0x94] sm:$0xff]  }
  0x21   : > { %438 = vmatprep.subr.bf16.mxu0 %v1538_v0  ;;  %612 = vmatprep.subr.bf16.mxu1 %v1538_v0  ;;  %v1422_v25 = vld [vmem:[%s1637_s9 + $0x50] ss:$0 sps:$4 sm:$0x33]   ;;  %v1420_v26 = vld [vmem:[%s1637_s9 + $0x48] sm:$0xff]   ;;  %v1421_v28 = vld [vmem:[%s1637_s9 + $0x9c] sm:$0xff]  }
  0x22   : > { %v1423_v27 = vld [vmem:[%s1637_s9 + $0xa4] ss:$0 sps:$4 sm:$0x33]   ;;  %v432_v29 = vsel %vm430_vm1, %v1422_v25, 0  ;;  %v1430_v33 = vld [vmem:[%s1637_s9 + $0xa8] sm:$0xff]   ;;  %v1431_v35 = vld [vmem:[%s1637_s9 + $0xfc] sm:$0xff]  }
  0x23   : > { %v606_v30 = vsel %vm430_vm1, %v1423_v27, 0  ;;  %v1432_v39 = vld [vmem:[%s1637_s9 + $0xb0] sm:$0xff]   ;;  %v1433_v41 = vld [vmem:[%s1637_s9 + $0x104] sm:$0xff]   ;;  %v1434_v43 = vld [vmem:[%s1637_s9 + $0xb8] sm:$0xff]  }
  0x24   : > { %439 = vmatpush1.bf16.msra.mxu0 %v1406_v11  ;;  %613 = vmatpush1.bf16.msra.mxu1 %v1407_v12  ;;  %v1435_v44 = vld [vmem:[%s1637_s9 + $0x10c] sm:$0xff]   ;;  %v1436_v45 = vld [vmem:[%s1637_s9 + $0xc0] sm:$0xff]   ;;  %v1437_v46 = vld [vmem:[%s1637_s9 + $0x114] sm:$0xff]  }
  0x25   : > { %440 = vmatprep.subr.bf16.mxu0 %v1538_v0  ;;  %614 = vmatprep.subr.bf16.mxu1 %v1538_v0  ;;  %v1438_v47 = vld [vmem:[%s1637_s9 + $0xc8] sm:$0xff]   ;;  %v1439_v48 = vld [vmem:[%s1637_s9 + $0x11c] sm:$0xff]   ;;  %v1440_v49 = vld [vmem:[%s1637_s9 + $0xd0] sm:$0xff]  }
  0x26   : > { %v1441_v50 = vld [vmem:[%s1637_s9 + $0x124] sm:$0xff]   ;;  %v1442_v51 = vld [vmem:[%s1637_s9 + $0xd8] sm:$0xff]   ;;  %v1443_v52 = vld [vmem:[%s1637_s9 + $0x12c] sm:$0xff]  }
  0x27   : > { %v1444_v53 = vld [vmem:[%s1637_s9 + $0xe0] sm:$0xff]   ;;  %v1445_v54 = vld [vmem:[%s1637_s9 + $0x134] sm:$0xff]   ;;  %v1446_v55 = vld [vmem:[%s1637_s9 + $0xe8] sm:$0xff]  }
  0x28   : > { %441 = vmatpush1.bf16.msra.mxu0 %v1408_v13  ;;  %615 = vmatpush1.bf16.msra.mxu1 %v1409_v14  ;;  %v1447_v56 = vld [vmem:[%s1637_s9 + $0x13c] sm:$0xff]   ;;  %v1448_v57 = vld [vmem:[%s1637_s9 + $0xf0] sm:$0xff]   ;;  %v1449_v58 = vld [vmem:[%s1637_s9 + $0x144] sm:$0xff]  }
  0x29   : > { %442 = vmatprep.subr.bf16.mxu0 %v1538_v0  ;;  %616 = vmatprep.subr.bf16.mxu1 %v1538_v0  ;;  %v1450_v59 = vld [vmem:[%s1637_s9 + $0xf8] ss:$0 sps:$4 sm:$0x33]   ;;  %v1451_v60 = vld [vmem:[%s1637_s9 + $0x14c] ss:$0 sps:$4 sm:$0x33]  }
  0x2a   : > { %v780_v61 = vsel %vm430_vm1, %v1450_v59, 0  ;;  %v954_v62 = vsel %vm430_vm1, %v1451_v60, 0  ;;  %s274_s9 = sand.u32 1, %s1520_s13  }
  0x2b   : > { %s1180_s30 = sshll.u32 %s274_s9, 5  ;;  %s1802_s15 = scalar_lea.sflag [#allocation3], %s274_s9 }
  0x2c   : > { %443 = vmatpush1.bf16.msra.mxu0 %v1410_v15  ;;  %617 = vmatpush1.bf16.msra.mxu1 %v1411_v16  ;;  %s1773_s4 = scalar_lea.vmem [#allocation2], %s1180_s30 }
  0x2d   : > { %444 = vmatprep.subr.bf16.mxu0 %v1538_v0  ;;  %618 = vmatprep.subr.bf16.mxu1 %v1538_v0  ;;  %s1034_s6 = sshll.u32 %s1773_s4, 4  ;;  %s1792_s6 = int_to_ptr.vmem [resolvable:$true] %s1034_s6 }
  0x2e   : > { %s1458_s11 = scalar_lea.vmem %s1792_s6, 512  ;;  %p1465_p1 = scmp.lt.s32.totalorder %s1792_s6, %s1463_s19 }
  0x2f   : > { %p1459_p12 = scmp.ne.s32.totalorder %s1792_s6, %s1458_s11  ;;  %p1466_p2 = scmp.lt.s32.totalorder %s1464_s21, %s1458_s11 }
  0x30   : > { %445 = vmatpush1.bf16.msra.mxu0 %v1412_v17  ;;  %619 = vmatpush1.bf16.msra.mxu1 %v1413_v18 }
  0x31   : > { %446 = vmatprep.subr.bf16.mxu0 %v1538_v0  ;;  %620 = vmatprep.subr.bf16.mxu1 %v1538_v0  ;;  %p1460_p13 = pnand %p1459_p12, %p1602_p4  ;;  %p1467_p3 = por %p1466_p2, %p1465_p1 }
  0x33   : > { %p1461_p0 = pneg %p1460_p13 }
  0x34   : > { %447 = vmatpush1.bf16.msra.mxu0 %v1414_v19  ;;  %621 = vmatpush1.bf16.msra.mxu1 %v1415_v20 }
  0x35   : > { %448 = vmatprep.subr.bf16.mxu0 %v1538_v0  ;;  %622 = vmatprep.subr.bf16.mxu1 %v1538_v0  ;;  %p1468_p5 = pnand %p1467_p3, %p1461_p0 }
  0x38   : > { %449 = vmatpush1.bf16.msra.mxu0 %v1416_v21  ;;  %623 = vmatpush1.bf16.msra.mxu1 %v1417_v22 }
  0x39   : > { %450 = vmatprep.subr.bf16.mxu0 %v1538_v0  ;;  %624 = vmatprep.subr.bf16.mxu1 %v1538_v0 }
  0x3c   : > { %451 = vmatpush1.bf16.msra.mxu0 %v1418_v23  ;;  %625 = vmatpush1.bf16.msra.mxu1 %v1419_v24 }
  0x3d   : > { %452 = vmatprep.subr.bf16.mxu0 %v1538_v0  ;;  %626 = vmatprep.subr.bf16.mxu1 %v1538_v0 }
  0x40   : > { %453 = vmatpush1.bf16.msra.mxu0 %v1420_v26  ;;  %627 = vmatpush1.bf16.msra.mxu1 %v1421_v28 }
  0x41   : > { %454 = vmatprep.subr.bf16.mxu0 %v1538_v0  ;;  %628 = vmatprep.subr.bf16.mxu1 %v1538_v0 }
  0x44   : > { %455 = vmatpush1.bf16.msra.mxu0 %v432_v29  ;;  %629 = vmatpush1.bf16.msra.mxu1 %v606_v30 }
  0x45   : > { %782 = vmatprep.subr.bf16.mxu0 %v1538_v0  ;;  %956 = vmatprep.subr.bf16.mxu1 %v1538_v0 }
  0x47   : > { %467 = vmatmul.mubr.bf16.vlgmr.msra.gmra.mrb[0].mxu0 %v1424_v31  ;;  %641 = vmatmul.mubr.bf16.vlgmr.msra.gmra.mrb[0].mxu1 %v1427_v32 }
  0x48   : > { %783 = vmatpush1.bf16.msra.mxu0 %v1430_v33  ;;  %957 = vmatpush1.bf16.msra.mxu1 %v1431_v35 }
  0x49   : > { %784 = vmatprep.subr.bf16.mxu0 %v1538_v0  ;;  %958 = vmatprep.subr.bf16.mxu1 %v1538_v0 }
  0x4a   : > { %1279 = vmatprep.mubr.msk.bf16.mxu0 %vm426_vm0, %v1452_v37  ;;  %1322 = vmatprep.mubr.msk.bf16.mxu1 %vm426_vm0, %v1454_v38 }
  0x4c   : > { %785 = vmatpush1.bf16.msra.mxu0 %v1432_v39  ;;  %959 = vmatpush1.bf16.msra.mxu1 %v1433_v41 }
  0x4d   : > { %786 = vmatprep.subr.bf16.mxu0 %v1538_v0  ;;  %960 = vmatprep.subr.bf16.mxu1 %v1538_v0 }
  0x50   : > { %787 = vmatpush1.bf16.msra.mxu0 %v1434_v43  ;;  %961 = vmatpush1.bf16.msra.mxu1 %v1435_v44 }
  0x51   : > { %788 = vmatprep.subr.bf16.mxu0 %v1538_v0  ;;  %962 = vmatprep.subr.bf16.mxu1 %v1538_v0 }
  0x54   : > { %789 = vmatpush1.bf16.msra.mxu0 %v1436_v45  ;;  %963 = vmatpush1.bf16.msra.mxu1 %v1437_v46 }
  0x55   : > { %790 = vmatprep.subr.bf16.mxu0 %v1538_v0  ;;  %964 = vmatprep.subr.bf16.mxu1 %v1538_v0 }
  0x58   : > { %791 = vmatpush1.bf16.msra.mxu0 %v1438_v47  ;;  %965 = vmatpush1.bf16.msra.mxu1 %v1439_v48 }
  0x59   : > { %792 = vmatprep.subr.bf16.mxu0 %v1538_v0  ;;  %966 = vmatprep.subr.bf16.mxu1 %v1538_v0 }
  0x5c   : > { %793 = vmatpush1.bf16.msra.mxu0 %v1440_v49  ;;  %967 = vmatpush1.bf16.msra.mxu1 %v1441_v50 }
  0x5d   : > { %794 = vmatprep.subr.bf16.mxu0 %v1538_v0  ;;  %968 = vmatprep.subr.bf16.mxu1 %v1538_v0 }
  0x60   : > { %795 = vmatpush1.bf16.msra.mxu0 %v1442_v51  ;;  %969 = vmatpush1.bf16.msra.mxu1 %v1443_v52 }
  0x61   : > { %796 = vmatprep.subr.bf16.mxu0 %v1538_v0  ;;  %970 = vmatprep.subr.bf16.mxu1 %v1538_v0 }
  0x64   : > { %797 = vmatpush1.bf16.msra.mxu0 %v1444_v53  ;;  %971 = vmatpush1.bf16.msra.mxu1 %v1445_v54 }
  0x65   : > { %798 = vmatprep.subr.bf16.mxu0 %v1538_v0  ;;  %972 = vmatprep.subr.bf16.mxu1 %v1538_v0 }
  0x68   : > { %799 = vmatpush1.bf16.msra.mxu0 %v1446_v55  ;;  %973 = vmatpush1.bf16.msra.mxu1 %v1447_v56 }
  0x69   : > { %800 = vmatprep.subr.bf16.mxu0 %v1538_v0  ;;  %974 = vmatprep.subr.bf16.mxu1 %v1538_v0 }
  0x6c   : > { %801 = vmatpush1.bf16.msra.mxu0 %v1448_v57  ;;  %975 = vmatpush1.bf16.msra.mxu1 %v1449_v58 }
  0x6d   : > { %802 = vmatprep.subr.bf16.mxu0 %v1538_v0  ;;  %976 = vmatprep.subr.bf16.mxu1 %v1538_v0 }
  0x70   : > { %803 = vmatpush1.bf16.msra.mxu0 %v780_v61  ;;  %977 = vmatpush1.bf16.msra.mxu1 %v954_v62 }
  0x73   : > { %815 = vmatmul.mubr.bf16.vlgmr.msra.gmra.mrb[4].mxu0 %v1456_v63  ;;  %989 = vmatmul.mubr.bf16.vlgmr.msra.gmra.mrb[4].mxu1 %v1457_v1 }
  0x91   : > { %v523_v2 = vpop.permute.xlu1 %522  ;;  %v347_v3 = vpop.permute.xlu0 %346 }
  0x95   : > { %v528_v4 = vpop.permute.xlu1 %527  ;;  %v352_v5 = vpop.permute.xlu0 %351 }
  0x99   : > { %v702_v29 = vpop.permute.xlu1 %701  ;;  %v697_v30 = vpop.permute.xlu0 %696 }
  0x9d   : > { %v876_v31 = vpop.permute.xlu1 %875  ;;  %v871_v32 = vpop.permute.xlu0 %870 }
 0x11a   : > { %v468_v0 = vpop.f32.mrb[0].mxu0  ;;  %v642_v7 = vpop.f32.mrb[0].mxu1 }
 0x11b   : > { %v469_v6 = vadd.f32 %v468_v0, %v347_v3  ;;  %v470_v8 = vpop.f32.mrb[1].mxu0  ;;  %v643_v9 = vadd.f32 %v642_v7, %v523_v2  ;;  %v644_v10 = vpop.f32.mrb[1].mxu1 }
 0x11c   : > { %v471_v11 = vpop.f32.mrb[2].mxu0  ;;  %v645_v14 = vpop.f32.mrb[2].mxu1 }
 0x11d   : > { %vm475_vm2 = vcmp.ge.f32.partialorder %v469_v6, 0.0  ;;  %v477_v12 = vmul.f32 0.1, %v469_v6  ;;  %v472_v13 = vadd.f32 %v471_v11, %v352_v5  ;;  %v473_v15 = vpop.f32.mrb[3].mxu0  ;;  %vm649_vm3 = vcmp.ge.f32.partialorder %v643_v9, 0.0  ;;  %v647_v18 = vpop.f32.mrb[3].mxu1 }
 0x11e   : > { %v651_v16 = vmul.f32 0.1, %v643_v9  ;;  %v646_v17 = vadd.f32 %v645_v14, %v528_v4 }
 0x11f   : > { %v479_v19 = vsel %vm475_vm2, %v469_v6, %v477_v12  ;;  %vm476_vm5 = vcmp.ge.f32.partialorder %v472_v13, 0.0  ;;  %v478_v20 = vmul.f32 0.1, %v472_v13 }
 0x120   : > { %v1332_v21 = vpack.c.bf16 %v479_v19, %v479_v19  ;;  %v653_v22 = vsel %vm649_vm3, %v643_v9, %v651_v16  ;;  %vm650_vm6 = vcmp.ge.f32.partialorder %v646_v17, 0.0  ;;  %v652_v23 = vmul.f32 0.1, %v646_v17 }
 0x121   : > { %v1334_v24 = vpack.c.bf16 %v653_v22, %v653_v22  ;;  %v480_v25 = vsel %vm476_vm5, %v472_v13, %v478_v20 }
 0x122   : > { %490 = vst.msk [vmem:[%s1773_s4] sm:$0xf] %vm489_vm4, %v1332_v21  ;;  %v1333_v26 = vpack.c.bf16 %v480_v25, %v480_v25  ;;  %v654_v27 = vsel %vm650_vm6, %v646_v17, %v652_v23 }
 0x123   : > { %1239 = vst.msk [vmem:[%s1773_s4 + $0x8] sm:$0xf] %vm489_vm4, %v1334_v24  ;;  %v1335_v28 = vpack.c.bf16 %v654_v27, %v654_v27 }
 0x124   : > { %491 = vst.msk [vmem:[%s1773_s4 + $0x4] sm:$0xf] %vm489_vm4, %v1333_v26 }
 0x125   : > { %1240 = vst.msk [vmem:[%s1773_s4 + $0xc] sm:$0xf] %vm489_vm4, %v1335_v28 }
 0x146   : > { %v816_v33 = vpop.f32.mrb[4].mxu0  ;;  %v990_v35 = vpop.f32.mrb[4].mxu1 }
 0x147   : > { %v817_v34 = vadd.f32 %v816_v33, %v697_v30  ;;  %v818_v36 = vpop.f32.mrb[5].mxu0  ;;  %v991_v37 = vadd.f32 %v990_v35, %v871_v32  ;;  %v992_v38 = vpop.f32.mrb[5].mxu1 }
 0x148   : > { %v819_v39 = vpop.f32.mrb[6].mxu0  ;;  %v993_v42 = vpop.f32.mrb[6].mxu1 }
 0x149   : > { %vm823_vm7 = vcmp.ge.f32.partialorder %v817_v34, 0.0  ;;  %v825_v40 = vmul.f32 0.1, %v817_v34  ;;  %v820_v41 = vadd.f32 %v819_v39, %v702_v29  ;;  %v821_v43 = vpop.f32.mrb[7].mxu0  ;;  %vm997_vm8 = vcmp.ge.f32.partialorder %v991_v37, 0.0  ;;  %v995_v46 = vpop.f32.mrb[7].mxu1 }
 0x14a   : > { %v999_v44 = vmul.f32 0.1, %v991_v37  ;;  %v994_v45 = vadd.f32 %v993_v42, %v876_v31 }
 0x14b   : > { %v827_v47 = vsel %vm823_vm7, %v817_v34, %v825_v40  ;;  %vm824_vm9 = vcmp.ge.f32.partialorder %v820_v41, 0.0  ;;  %v826_v48 = vmul.f32 0.1, %v820_v41 }
 0x14c   : > { %v1336_v49 = vpack.c.bf16 %v827_v47, %v827_v47  ;;  %v1001_v50 = vsel %vm997_vm8, %v991_v37, %v999_v44  ;;  %vm998_vm10 = vcmp.ge.f32.partialorder %v994_v45, 0.0  ;;  %v1000_v51 = vmul.f32 0.1, %v994_v45 }
 0x14d   : > { %v1338_v52 = vpack.c.bf16 %v1001_v50, %v1001_v50  ;;  %v828_v53 = vsel %vm824_vm9, %v820_v41, %v826_v48 }
 0x14e   : > { %1282 = vst.msk [vmem:[%s1773_s4 + $0x10] sm:$0xf] %vm489_vm4, %v1336_v49  ;;  %v1337_v54 = vpack.c.bf16 %v828_v53, %v828_v53  ;;  %v1002_v55 = vsel %vm998_vm10, %v994_v45, %v1000_v51 }
 0x14f   : > { %1325 = vst.msk [vmem:[%s1773_s4 + $0x18] sm:$0xf] %vm489_vm4, %v1338_v52  ;;  %v1339_v56 = vpack.c.bf16 %v1002_v55, %v1002_v55 }
 0x150   : > { %1283 = vst.msk [vmem:[%s1773_s4 + $0x14] sm:$0xf] %vm489_vm4, %v1337_v54 }
 0x151   : > { %1326 = vst.msk [vmem:[%s1773_s4 + $0x1c] sm:$0xf] %vm489_vm4, %v1339_v56 }
 0x152   : > { %1471 = shalt.err (!%p1468_p5)
}
 0x153   : > { %s1472_s23 = scalar_lea.hbm %s1790_s10, 512  ;;  %s1476_s28 = scalar_lea.hbm %s1851_s3, 1024 }
 0x154   : > { %p1473_p6 = scmp.ne.s32.totalorder %s1790_s10, %s1472_s23  ;;  %p1477_p10 = scmp.lt.u32.totalorder %s1790_s10, %s1851_s3 }
 0x155   : > { %p1478_p11 = scmp.lt.u32.totalorder %s1476_s28, %s1472_s23  ;;  %p1480_p13 = scmp.lt.u32.totalorder %s1472_s23, %s1790_s10 }
 0x156   : > { %p1474_p7 = pnand %p1473_p6, %p1602_p4 }
 0x157   : > { %p1479_p12 = por %p1478_p11, %p1477_p10 }
 0x158   : > { %p1475_p9 = pneg %p1474_p7 }
 0x159   : > { %p1481_p0 = por %p1480_p13, %p1479_p12 }
 0x15b   : > { %p1482_p1 = pnand %p1481_p0, %p1475_p9 }
 0x15d   : > { %1485 = shalt.err (!%p1482_p1)
}
 0x15e   : > { %s1540_s30 = smov 64   ;;  %s1541_s4 = smov 4  }
 0x15f   : > { %1342 = dma.vmem_to_hbm [thread:$0]  (%p1602_p4), %s1792_s6, 512, %s1790_s10, %s1802_s15, %s1540_s30, %s1540_s30, %s1541_s4  }
 0x160 PF: > { %p1348_p2 = scmp.ge.s32.totalorder %s1536_s17, 2  ;;  %s1049_s5 = sand.u32 1, %s1516_s12  }
 0x161   : > { %s1050_s7 = scalar_lea.sflag [#allocation3], %s1049_s5 }
 0x162   : > { %p1345_p3 = pnand %p1348_p2, %p1609_p8 }
 0x164   : > { %1511 = dma.done.wait (!%p1345_p3), %s1050_s7, 512  }
 0x165   : > { %1513 = vsyncadd (!%p1345_p3), %s1050_s7, 4294966784  ;;  %s16_s17 = sadd.s32 1, %s1536_s17   ;;  %s1854_s12 = smov %s1520_s13 }
 0x166   : > { %p13_p5 = scmp.ge.s32.totalorder %s16_s17, 4   ;;  %s1855_s13 = smov %s1524_s14 }
 0x167   : > { %s1856_s14 = smov %s1615_s25  ;;  %s1857_s15 = smov %s1532_s16 }
 0x168   : > { %s1858_s16 = smov %s1860_s20  ;;  %15 = sbr.rel (!%p13_p5) target bundleno = 4 (0x4), region = 85 }
 0x16f   :  { %1055 = vsyncpa [#allocation3], 1 }
 0x170   :  { %1057 = vsyncpa [#allocation3 + $0x1], 1 }

</bundles_post_ra>
